<compile_context>
chip_gen: v7x
topology: tpu7x:2x2x1
jax: 0.10.0
libtpu: 0.0.40
codegen_flags: <defaults>
</compile_context>

<pallas_src>
import functools

import jax
import jax.numpy as jnp
from jax.experimental import pallas as pl
from jax.experimental.pallas import tpu as pltpu

_LANE = 128
_SUBLANE = 8


def _round_up(n, m):
    return ((n + m - 1) // m) * m


def _cdiv(a, b):
    return -(-a // b)


def _pad2d(a, rows, cols):
    r, c = a.shape
    if r == rows and c == cols:
        return a
    return jnp.pad(a, ((0, rows - r), (0, cols - c)))


def _vmem_caps():
    """Chip-aware (budget, limit) in bytes. Conservative 64 MiB fallback."""
    cap = 64 * 1024 * 1024
    try:
        info = pltpu.get_tpu_info()
        cap = int(getattr(info, "vmem_capacity_bytes", cap))
    except Exception:  # no TPU info available: keep conservative fallback
        pass
    budget = (2 * cap) // 5   # ~40% for our blocks + scratch
    limit = (3 * cap) // 5    # ~60% Mosaic scoped limit (headroom for internals)
    return budget, limit


# -----------------------------------------------------------------------------
# Kernel
# -----------------------------------------------------------------------------
def mlp_kernel(x_ref, w1_ref, b1_ref, w2_ref, b2_ref, o_ref, h_ref, acc_ref, *,
               negative_slope):
    j = pl.program_id(1)            # output (dim2) tile
    k = pl.program_id(2)            # hidden (dim1) chunk — reduction axis

    # ---- Linear 1 + LeakyReLU: compute hidden chunk k once per batch tile ----
    # Cached in VMEM (h_ref) and reused for every output tile j > 0.
    @pl.when(j == 0)
    def _():
        h = jnp.dot(x_ref[...], w1_ref[...], preferred_element_type=jnp.float32)
        h = h + b1_ref[...].astype(jnp.float32)          # (1, tile_d1) broadcast
        h_ref[k] = jnp.where(h > 0, h, negative_slope * h)

    # ---- Linear 2: accumulate over hidden chunks in f32 ----
    @pl.when(k == 0)
    def _():
        acc_ref[...] = jnp.zeros_like(acc_ref)

    # NOTE: for sub-f32 weights this downcasts the f32 activations to the
    # weight dtype before the second MXU op (standard bf16 practice; identity
    # for the f32 demo below).
    acc_ref[...] += jnp.dot(h_ref[k].astype(w2_ref.dtype), w2_ref[...],
                            preferred_element_type=jnp.float32)

    @pl.when(k == pl.num_programs(2) - 1)
    def _():
        out = acc_ref[...] + b2_ref[...].astype(jnp.float32)
        o_ref[...] = out.astype(o_ref.dtype)


# -----------------------------------------------------------------------------
# Wrapper
# -----------------------------------------------------------------------------
def prepare_params(w1, b1, w2, b2, dtype=None):
    """Pad weights/biases ONCE (at init) to lane-aligned shapes.

    w1: [in, dim1], b1: [dim1], w2: [dim1, dim2], b2: [dim2]
    (weights are [in, out], i.e. transposed vs. PyTorch's nn.Linear [out, in]).
    """
    if dtype is not None:
        w1, b1, w2, b2 = (a.astype(dtype) for a in (w1, b1, w2, b2))
    K, d1 = w1.shape
    d2 = w2.shape[1]
    K_p = _round_up(K, _LANE)
    d1_p = _round_up(d1, _LANE)
    d2_p = _round_up(d2, _LANE)
    return dict(
        w1=_pad2d(w1, K_p, d1_p),
        b1=_pad2d(b1.reshape(1, d1), 1, d1_p),
        w2=_pad2d(w2, d1_p, d2_p),
        b2=_pad2d(b2.reshape(1, d2), 1, d2_p),
        in_features=K, dim1=d1, dim2=d2,
    )


def _choose_tiles(B, K_p, d1_p, d2_p, itemsize, budget, tile_b, tile_d1, tile_n):
    # Output tile width: keep it lane-dense.  Full width when modest (single
    # output tile, unmasked stores); otherwise 256/128.
    if tile_n is None:
        if d2_p <= 512:
            tile_n = d2_p
        elif d2_p % 256 == 0:
            tile_n = 256
        else:
            tile_n = 128
    assert d2_p % tile_n == 0, "tile_n must divide the padded dim2"

    # Hidden chunk: prefer full width (single reduction step); shrink if the
    # double-buffered W1 block would eat more than ~1/4 of the budget.
    if tile_d1 is None:
        tile_d1 = _LANE
        w_budget = budget // 4
        for cand in (d1_p, 2048, 1024, 512, 256, 128):
            if cand <= d1_p and d1_p % cand == 0:
                tile_d1 = cand
                if 2 * K_p * cand * itemsize <= w_budget:
                    break
    assert d1_p % tile_d1 == 0, "tile_d1 must divide the padded dim1"

    def vmem_bytes(tb):
        return (itemsize * (2 * tb * K_p             # x tile (double-buffered)
                            + 2 * K_p * tile_d1      # W1 chunk
                            + 2 * tile_d1            # b1 chunk
                            + 2 * tile_d1 * tile_n   # W2 chunk
                            + 2 * tile_n             # b2 chunk
                            + 2 * tb * tile_n)       # out tile
                + 4 * (d1_p // tile_d1) * tb * tile_d1   # f32 hidden cache
                + 4 * tb * tile_n)                       # f32 accumulator

    if tile_b is None:
        # Minimal batch padding: split B into ~target-row tiles instead of
        # rounding the whole batch up to a fixed tile.
        target = 512 if budget <= 33 * 1024 * 1024 else 1024
        n_tiles = max(1, _cdiv(B, target))
        tile_b = _round_up(_cdiv(B, n_tiles), _SUBLANE)
        while tile_b > _SUBLANE and vmem_bytes(tile_b) > budget:
            tile_b = _round_up(tile_b // 2, _SUBLANE)
    tile_b = max(_SUBLANE, _round_up(tile_b, _SUBLANE))
    return tile_b, tile_d1, tile_n


def mlp_forward(x, params, *, tile_b=None, tile_d1=None, tile_n=None,
                negative_slope=0.01,
                vmem_budget_bytes=None, vmem_limit_bytes=None):
    """x: [B, in_features]; params from prepare_params()."""
    B, K = x.shape
    assert K == params["in_features"]
    w1_p, b1_p, w2_p, b2_p = params["w1"], params["b1"], params["w2"], params["b2"]
    K_p, d1_p = w1_p.shape
    d2_p = w2_p.shape[1]
    dim2 = params["dim2"]

    if x.dtype != w1_p.dtype:
        x = x.astype(w1_p.dtype)
    itemsize = x.dtype.itemsize

    budget, limit = _vmem_caps()
    if vmem_budget_bytes is not None:
        budget = vmem_budget_bytes
    if vmem_limit_bytes is not None:
        limit = vmem_limit_bytes

    tile_b, tile_d1, tile_n = _choose_tiles(
        B, K_p, d1_p, d2_p, itemsize, budget, tile_b, tile_d1, tile_n)

    B_p = _round_up(B, tile_b)
    x_p = _pad2d(x, B_p, K_p)        # only x is padded per call

    n_i = B_p // tile_b
    n_j = d2_p // tile_n
    n_k = d1_p // tile_d1
    grid = (n_i, n_j, n_k)

    # W1 is re-streamed per output tile only when both n_j>1 and n_k>1 (its
    # block index changes between j sweeps); otherwise it is fetched once.
    w1_fetches = n_i * n_j if (n_k > 1 and n_j > 1) else 1
    cost = pl.CostEstimate(
        flops=int(2 * B_p * K_p * d1_p + 2 * B_p * d1_p * d2_p),
        transcendentals=0,
        bytes_accessed=int(itemsize * (
            B_p * K_p                                  # x, once per batch tile
            + w1_fetches * K_p * d1_p + d1_p           # W1 + b1
            + n_i * (d1_p * d2_p + d2_p)               # W2 + b2 per batch tile
            + B_p * d2_p)),                            # output
    )

    kernel = functools.partial(mlp_kernel, negative_slope=negative_slope)

    out_p = pl.pallas_call(
        kernel,
        out_shape=jax.ShapeDtypeStruct((B_p, d2_p), x.dtype),
        grid_spec=pltpu.PrefetchScalarGridSpec(
            num_scalar_prefetch=0,
            grid=grid,
            in_specs=[
                pl.BlockSpec((tile_b, K_p), lambda i, j, k: (i, 0)),      # x
                pl.BlockSpec((K_p, tile_d1), lambda i, j, k: (0, k)),     # W1
                pl.BlockSpec((1, tile_d1), lambda i, j, k: (0, k)),       # b1
                pl.BlockSpec((tile_d1, tile_n), lambda i, j, k: (k, j)),  # W2
                pl.BlockSpec((1, tile_n), lambda i, j, k: (0, j)),        # b2
            ],
            out_specs=pl.BlockSpec((tile_b, tile_n), lambda i, j, k: (i, j)),
            scratch_shapes=[
                pltpu.VMEM((n_k, tile_b, tile_d1), jnp.float32),  # cached hidden
                pltpu.VMEM((tile_b, tile_n), jnp.float32),        # f32 accumulator
            ],
        ),
        compiler_params=pltpu.CompilerParams(
            dimension_semantics=("parallel", "arbitrary", "arbitrary"),
            vmem_limit_bytes=int(limit)),
        cost_estimate=cost,
    )(x_p, w1_p, b1_p, w2_p, b2_p)

    return out_p[:B, :dim2]


# -----------------------------------------------------------------------------
# Reference + demo
# -----------------------------------------------------------------------------
def init_params(key, input_size, dim1, dim2, dtype=jnp.float32):
    """Mimics nn.Linear init: uniform(-1/sqrt(fan_in), 1/sqrt(fan_in))."""
    k1, k2, k3, k4 = jax.random.split(key, 4)
    bound1 = 1.0 / (input_size ** 0.5)
    bound2 = 1.0 / (dim1 ** 0.5)
    w1 = jax.random.uniform(k1, (input_size, dim1), dtype, -bound1, bound1)
    b1 = jax.random.uniform(k2, (dim1,), dtype, -bound1, bound1)
    w2 = jax.random.uniform(k3, (dim1, dim2), dtype, -bound2, bound2)
    b2 = jax.random.uniform(k4, (dim2,), dtype, -bound2, bound2)
    return w1, b1, w2, b2


def mlp_reference(x, w1, b1, w2, b2):
    hp = jax.lax.Precision.HIGHEST
    h = jnp.dot(x, w1, precision=hp) + b1.reshape(1, -1)
    h = jnp.where(h > 0, h, 0.01 * h)
    return jnp.dot(h, w2, precision=hp) + b2.reshape(1, -1)


if __name__ == "__main__":
    key = jax.random.PRNGKey(0)
    kx, kp, kx2, kp2 = jax.random.split(key, 4)

    # --- Test 1: demo shapes from the module (single-tile grid) ---
    batch, input_size, dim1, dim2 = 8, 32, 64, 16
    x = jax.random.normal(kx, (batch, input_size), jnp.float32)
    w1, b1, w2, b2 = init_params(kp, input_size, dim1, dim2)
    params = prepare_params(w1, b1, w2, b2)   # weights padded once, at init

    out = jax.block_until_ready(mlp_forward(x, params))
    ref = mlp_reference(x, w1, b1, w2, b2)
    assert out.shape == (batch, dim2)
    assert jnp.allclose(out, ref, atol=1e-4, rtol=1e-4), "mismatch vs reference (small)"

    # --- Test 2: non-divisible shapes exercising the multi-tile grid
    #     (3 batch tiles x 2 output tiles x 3 hidden chunks), i.e. the
    #     hidden-cache reuse and the dim1 reduction/accumulator path. ---
    B2, K2, D1, D2 = 300, 96, 300, 200
    x2 = jax.random.normal(kx2, (B2, K2), jnp.float32)
    w1b, b1b, w2b, b2b = init_params(kp2, K2, D1, D2)
    params2 = prepare_params(w1b, b1b, w2b, b2b)

    out2 = jax.block_until_ready(
        mlp_forward(x2, params2, tile_b=128, tile_d1=128, tile_n=128))
    ref2 = mlp_reference(x2, w1b, b1b, w2b, b2b)
    assert out2.shape == (B2, D2)
    assert jnp.allclose(out2, ref2, atol=1e-3, rtol=1e-3), "mismatch vs reference (tiled)"

    # TODO(synk): for extremely wide dim1 where even the f32 hidden cache
    # (tile_b x dim1) exceeds the per-core VMEM budget, stream the hidden
    # activation per chunk instead of caching it (trades first-GEMM recompute
    # for VMEM).

    print("KERNEL_OK")
</pallas_src>

<mosaic_0001>
module attributes {stable_mosaic.version = 11 : i64} {
  func.func @mlp_kernel(%arg0: i32, %arg1: i32, %arg2: i32, %arg3: memref<8x128xf32, #tpu.memory_space<vmem>>, %arg4: memref<128x128xf32, #tpu.memory_space<vmem>>, %arg5: memref<1x128xf32, #tpu.memory_space<vmem>>, %arg6: memref<128x128xf32, #tpu.memory_space<vmem>>, %arg7: memref<1x128xf32, #tpu.memory_space<vmem>>, %arg8: memref<8x128xf32, #tpu.memory_space<vmem>>, %arg9: memref<1x8x128xf32, #tpu.memory_space<vmem>>, %arg10: memref<8x128xf32, #tpu.memory_space<vmem>>) attributes {dimension_semantics = [#tpu.dimension_semantics<parallel>, #tpu.dimension_semantics<arbitrary>, #tpu.dimension_semantics<arbitrary>], iteration_bounds = array<i64: 1, 1, 1>, scalar_prefetch = 0 : i64, scratch_operands = 2 : i64, tpu.core_type = #tpu.core_type<tc>, window_params = [{transform_indices = @transform_0, window_bounds = array<i64: 8, 128>}, {transform_indices = @transform_1, window_bounds = array<i64: 128, 128>}, {transform_indices = @transform_2, window_bounds = array<i64: 1, 128>}, {transform_indices = @transform_3, window_bounds = array<i64: 128, 128>}, {transform_indices = @transform_4, window_bounds = array<i64: 1, 128>}, {transform_indices = @transform_5, window_bounds = array<i64: 8, 128>}]} {
    %c0_i32 = arith.constant 0 : i32
    %0 = arith.cmpi eq, %arg1, %c0_i32 : i32
    %1 = arith.extui %0 : i1 to i32
    %c0_i32_0 = arith.constant 0 : i32
    %2 = arith.cmpi ne, %1, %c0_i32_0 : i32
    scf.if %2 {
      %c0_12 = arith.constant 0 : index
      %c0_13 = arith.constant 0 : index
      %17 = vector.load %arg3[%c0_12, %c0_13] : memref<8x128xf32, #tpu.memory_space<vmem>>, vector<8x128xf32>
      %c0_14 = arith.constant 0 : index
      %c0_15 = arith.constant 0 : index
      %18 = vector.load %arg4[%c0_14, %c0_15] : memref<128x128xf32, #tpu.memory_space<vmem>>, vector<128x128xf32>
      %cst_16 = arith.constant dense<0.000000e+00> : vector<8x128xf32>
      %19 = tpu.matmul %17, %18, %cst_16 {dimension_numbers = #tpu.dot_dimension_numbers<[1], [0], [0], [1], [0, 0, 1, 1], [], []>} : vector<8x128xf32>, vector<128x128xf32>, vector<8x128xf32> -> vector<8x128xf32>
      %c0_17 = arith.constant 0 : index
      %c0_18 = arith.constant 0 : index
      %20 = vector.load %arg5[%c0_17, %c0_18] : memref<1x128xf32, #tpu.memory_space<vmem>>, vector<1x128xf32>
      %21 = vector.broadcast %20 : vector<1x128xf32> to vector<8x128xf32>
      %22 = arith.addf %19, %21 : vector<8x128xf32>
      %cst_19 = arith.constant 0.000000e+00 : f32
      %23 = vector.broadcast %cst_19 : f32 to vector<8x128xf32>
      %24 = arith.cmpf ogt, %22, %23 : vector<8x128xf32>
      %cst_20 = arith.constant 0.00999999977 : f32
      %25 = vector.broadcast %cst_20 : f32 to vector<8x128xf32>
      %26 = arith.mulf %25, %22 : vector<8x128xf32>
      %27 = arith.select %24, %22, %26 : vector<8x128xi1>, vector<8x128xf32>
      %28 = arith.index_cast %arg2 : i32 to index
      %c0_21 = arith.constant 0 : index
      %c0_22 = arith.constant 0 : index
      %29 = vector.load %arg9[%28, %c0_21, %c0_22] : memref<1x8x128xf32, #tpu.memory_space<vmem>>, vector<1x8x128xf32>
      %30 = vector.shape_cast %29 : vector<1x8x128xf32> to vector<8x128xf32>
      %31 = vector.shape_cast %27 : vector<8x128xf32> to vector<1x8x128xf32>
      tpu.vector_store %arg9[%28, %c0_21, %c0_22], %31 {strides = array<i32>} : memref<1x8x128xf32, #tpu.memory_space<vmem>>, vector<1x8x128xf32>,
    } else {
    }
    %c0_i32_1 = arith.constant 0 : i32
    %3 = arith.cmpi eq, %arg2, %c0_i32_1 : i32
    %4 = arith.extui %3 : i1 to i32
    %c0_i32_2 = arith.constant 0 : i32
    %5 = arith.cmpi ne, %4, %c0_i32_2 : i32
    scf.if %5 {
      %cst_12 = arith.constant 0.000000e+00 : f32
      %17 = vector.broadcast %cst_12 : f32 to vector<8x128xf32>
      %c0_13 = arith.constant 0 : index
      %c0_14 = arith.constant 0 : index
      %18 = vector.load %arg10[%c0_13, %c0_14] : memref<8x128xf32, #tpu.memory_space<vmem>>, vector<8x128xf32>
      tpu.vector_store %arg10[%c0_13, %c0_14], %17 {strides = array<i32>} : memref<8x128xf32, #tpu.memory_space<vmem>>, vector<8x128xf32>,
    } else {
    }
    %c0 = arith.constant 0 : index
    %c0_3 = arith.constant 0 : index
    %6 = vector.load %arg10[%c0, %c0_3] : memref<8x128xf32, #tpu.memory_space<vmem>>, vector<8x128xf32>
    %7 = arith.index_cast %arg2 : i32 to index
    %c0_4 = arith.constant 0 : index
    %c0_5 = arith.constant 0 : index
    %8 = vector.load %arg9[%7, %c0_4, %c0_5] : memref<1x8x128xf32, #tpu.memory_space<vmem>>, vector<1x8x128xf32>
    %9 = vector.shape_cast %8 : vector<1x8x128xf32> to vector<8x128xf32>
    %c0_6 = arith.constant 0 : index
    %c0_7 = arith.constant 0 : index
    %10 = vector.load %arg6[%c0_6, %c0_7] : memref<128x128xf32, #tpu.memory_space<vmem>>, vector<128x128xf32>
    %cst = arith.constant dense<0.000000e+00> : vector<8x128xf32>
    %11 = tpu.matmul %9, %10, %cst {dimension_numbers = #tpu.dot_dimension_numbers<[1], [0], [0], [1], [0, 0, 1, 1], [], []>} : vector<8x128xf32>, vector<128x128xf32>, vector<8x128xf32> -> vector<8x128xf32>
    %12 = arith.addf %6, %11 : vector<8x128xf32>
    %c0_8 = arith.constant 0 : index
    %c0_9 = arith.constant 0 : index
    %13 = vector.load %arg10[%c0_8, %c0_9] : memref<8x128xf32, #tpu.memory_space<vmem>>, vector<8x128xf32>
    tpu.vector_store %arg10[%c0_8, %c0_9], %12 {strides = array<i32>} : memref<8x128xf32, #tpu.memory_space<vmem>>, vector<8x128xf32>,
    %c0_i32_10 = arith.constant 0 : i32
    %14 = arith.cmpi eq, %arg2, %c0_i32_10 : i32
    %15 = arith.extui %14 : i1 to i32
    %c0_i32_11 = arith.constant 0 : i32
    %16 = arith.cmpi ne, %15, %c0_i32_11 : i32
    scf.if %16 {
      %c0_12 = arith.constant 0 : index
      %c0_13 = arith.constant 0 : index
      %17 = vector.load %arg10[%c0_12, %c0_13] : memref<8x128xf32, #tpu.memory_space<vmem>>, vector<8x128xf32>
      %c0_14 = arith.constant 0 : index
      %c0_15 = arith.constant 0 : index
      %18 = vector.load %arg7[%c0_14, %c0_15] : memref<1x128xf32, #tpu.memory_space<vmem>>, vector<1x128xf32>
      %19 = vector.broadcast %18 : vector<1x128xf32> to vector<8x128xf32>
      %20 = arith.addf %17, %19 : vector<8x128xf32>
      %c0_16 = arith.constant 0 : index
      %c0_17 = arith.constant 0 : index
      %21 = vector.load %arg8[%c0_16, %c0_17] : memref<8x128xf32, #tpu.memory_space<vmem>>, vector<8x128xf32>
      tpu.vector_store %arg8[%c0_16, %c0_17], %20 {strides = array<i32>} : memref<8x128xf32, #tpu.memory_space<vmem>>, vector<8x128xf32>,
    } else {
    }
    return
  }
  func.func @transform_0(%arg0: i32, %arg1: i32, %arg2: i32) -> (i32, i32) {
    %c0_i32 = arith.constant 0 : i32
    %c0_i32_0 = arith.constant 0 : i32
    return %arg0, %c0_i32 : i32, i32
  }
  func.func @transform_1(%arg0: i32, %arg1: i32, %arg2: i32) -> (i32, i32) {
    %c0_i32 = arith.constant 0 : i32
    %c0_i32_0 = arith.constant 0 : i32
    return %c0_i32, %arg2 : i32, i32
  }
  func.func @transform_2(%arg0: i32, %arg1: i32, %arg2: i32) -> (i32, i32) {
    %c0_i32 = arith.constant 0 : i32
    %c0_i32_0 = arith.constant 0 : i32
    return %c0_i32, %arg2 : i32, i32
  }
  func.func @transform_3(%arg0: i32, %arg1: i32, %arg2: i32) -> (i32, i32) {
    %c0_i32 = arith.constant 0 : i32
    return %arg2, %arg1 : i32, i32
  }
  func.func @transform_4(%arg0: i32, %arg1: i32, %arg2: i32) -> (i32, i32) {
    %c0_i32 = arith.constant 0 : i32
    %c0_i32_0 = arith.constant 0 : i32
    return %c0_i32, %arg1 : i32, i32
  }
  func.func @transform_5(%arg0: i32, %arg1: i32, %arg2: i32) -> (i32, i32) {
    %c0_i32 = arith.constant 0 : i32
    return %arg0, %arg1 : i32, i32
  }
}

</mosaic_0001>

<bundles_post_ra>
// kernel: tpu_custom_call.1
= control target key start
LH: loop header
LB: loop body
LE: loop exit
PB: predicated region body
PF: predicated region fallthrough
CT: control target
= control target key end

     0   :  { %10 = vsyncpa [#allocation5], 0  ;;  %s662_s0 = inlined_call_operand.hbm [shape: f32[8,128], index: 0, kind: input, shape index: {}]   ;;  %s663_s1 = inlined_call_operand.hbm [shape: f32[128,128], index: 1, kind: input, shape index: {}]   ;;  %s664_s2 = inlined_call_operand.vmem [shape: f32[1,128], index: 2, kind: input, shape index: {}]   ;;  %s665_s3 = inlined_call_operand.hbm [shape: f32[128,128], index: 3, kind: input, shape index: {}]   ;;  %s666_s4 = inlined_call_operand.vmem [shape: f32[1,128], index: 4, kind: input, shape index: {}]   ;;  %s667_s5 = inlined_call_operand.hbm [shape: f32[8,128], index: 5, kind: output, shape index: {}]  }
   0x1   :  { %11 = vsyncpa [#allocation8], 0 }
   0x2   :  { %12 = vsyncpa [#allocation6], 0  ;;  %s547_s18 = smov [#allocation7]   ;;  %s453_s22 = scalar_lea.hbm %s663_s1, 2048 }
   0x3   :  { %s28_s19 = sshll.u32 %s547_s18, 4  ;;  %p454_p0 = scmp.ne.s32.totalorder %s663_s1, %s453_s22  ;;  %s29_s19 = int_to_ptr.vmem [resolvable:$true] %s28_s19 }
   0x4   :  { %p457_p1 = scmp.lt.u32.totalorder %s453_s22, %s663_s1 }
   0x6   :  { %p459_p2 = pnand %p457_p1, %p454_p0 }
   0x8   :  { %462 = shalt.err (!%p459_p2)
}
   0x9   :  { %s463_s27 = scalar_lea.vmem %s29_s19, 2048  ;;  %p468_p4 = scmp.lt.s32.totalorder %s29_s19, %s29_s19 }
   0xa   :  { %p464_p3 = scmp.ne.s32.totalorder %s29_s19, %s463_s27  ;;  %p469_p5 = scmp.lt.s32.totalorder %s463_s27, %s463_s27 }
   0xc   :  { %p470_p6 = por %p469_p5, %p468_p4 }
   0xe   :  { %p471_p7 = pnand %p470_p6, %p464_p3 }
  0x10   :  { %474 = shalt.err (!%p471_p7)
}
  0x11   :  { %s548_s28 = smov 128   ;;  %s549_s29 = smov 8  }
  0x12   :  { %34 = dma.hbm_to_vmem [thread:$0]  %s663_s1, 2048, %s29_s19, [#allocation8], %s548_s28, %s548_s28, %s549_s29  }
  0x13   :  { %s550_s7 = smov [#allocation4]   ;;  %s551_s9 = smov [#allocation9]  }
  0x14   :  { %s19_s8 = sshll.u32 %s550_s7, 4  ;;  %s42_s10 = sshll.u32 %s551_s9, 4  ;;  %s20_s8 = int_to_ptr.vmem [resolvable:$true] %s19_s8  ;;  %s43_s10 = int_to_ptr.vmem [resolvable:$true] %s42_s10 }
  0x15   :  { %s475_s13 = scalar_lea.hbm %s662_s0, 128 }
  0x16   :  { %p476_p8 = scmp.ne.s32.totalorder %s662_s0, %s475_s13  ;;  %p479_p9 = scmp.lt.u32.totalorder %s475_s13, %s662_s0 }
  0x18   :  { %p481_p10 = pnand %p479_p9, %p476_p8 }
  0x1a   :  { %484 = shalt.err (!%p481_p10)
}
  0x1b   :  { %s485_s1 = scalar_lea.vmem %s20_s8, 128  ;;  %p490_p12 = scmp.lt.s32.totalorder %s20_s8, %s20_s8 }
  0x1c   :  { %p486_p11 = scmp.ne.s32.totalorder %s20_s8, %s485_s1  ;;  %p491_p13 = scmp.lt.s32.totalorder %s485_s1, %s485_s1 }
  0x1e   :  { %p492_p0 = por %p491_p13, %p490_p12 }
  0x20   :  { %p493_p1 = pnand %p492_p0, %p486_p11 }
  0x22   :  { %496 = shalt.err (!%p493_p1)
}
  0x23   :  { %22 = dma.hbm_to_vmem [thread:$0]  %s662_s0, 128, %s20_s8, [#allocation5]  }
  0x24   :  { %s497_s22 = scalar_lea.hbm %s665_s3, 2048 }
  0x25   :  { %p498_p2 = scmp.ne.s32.totalorder %s665_s3, %s497_s22  ;;  %p501_p3 = scmp.lt.u32.totalorder %s497_s22, %s665_s3 }
  0x27   :  { %p503_p4 = pnand %p501_p3, %p498_p2 }
  0x29   :  { %506 = shalt.err (!%p503_p4)
}
  0x2a   :  { %s507_s27 = scalar_lea.vmem %s43_s10, 2048  ;;  %p512_p6 = scmp.lt.s32.totalorder %s43_s10, %s43_s10 }
  0x2b   :  { %p508_p5 = scmp.ne.s32.totalorder %s43_s10, %s507_s27  ;;  %p513_p7 = scmp.lt.s32.totalorder %s507_s27, %s507_s27 }
  0x2d   :  { %p514_p8 = por %p513_p7, %p512_p6 }
  0x2f   :  { %p515_p9 = pnand %p514_p8, %p508_p5 }
  0x31   :  { %518 = shalt.err (!%p515_p9)
}
  0x32   :  { %48 = dma.hbm_to_vmem [thread:$0]  %s665_s3, 2048, %s43_s10, [#allocation8], %s548_s28, %s548_s28, %s549_s29  }
  0x33   :  { %541 = dma.done.wait [#allocation5], 128  }
  0x34   :  { %542 = vsyncadd [#allocation5], 4294967168 }
  0x35   :  { %543 = dma.done.wait [#allocation8], 4096  }
  0x36   :  { %544 = vsyncadd [#allocation8], 4294963200  ;;  %v552_v0 = vmov 0.0|0.0   ;;  %vm553_vm0 = vmmov 0   ;;  %v554_v1 = vmov 0.0   ;;  %v65_v2 = vld [vmem:[#allocation7] sm:$0xff] }
  0x37   :  { %396 = vmatprep.subr.bf16.mxu0 %v552_v0  ;;  %358 = vmatprep.mubr.msk.f32.mxu0 %vm553_vm0, %v554_v1  ;;  %v66_v3 = vld [vmem:[#allocation7 + $0x8] sm:$0xff]  ;;  %v67_v4 = vld [vmem:[#allocation7 + $0x10] sm:$0xff]  ;;  %v68_v6 = vld [vmem:[#allocation7 + $0x18] sm:$0xff]  ;;  %s555_s7 = smov [#allocation10]  }
  0x38   :  { %420 = vmatprep.subr.bf16.mxu1 %v552_v0  ;;  %393 = vmatprep.mubr.msk.f32.mxu1 %vm553_vm0, %v554_v1  ;;  %v397_v5 = vpack.c.bf16 %v66_v3, %v65_v2  ;;  %v400_v7 = vpack.c.bf16 %v68_v6, %v67_v4  ;;  %v69_v8 = vld [vmem:[#allocation7 + $0x20] sm:$0xff]  ;;  %v70_v9 = vld [vmem:[#allocation7 + $0x28] sm:$0xff]  ;;  %v175_v12 = vld [vmem:[#allocation9 + $0x10] sm:$0xff]  ;;  %s280_s8 = sshll.u32 %s555_s7, 4  ;;  %s281_s8 = int_to_ptr.vmem [resolvable:$true] %s280_s8 }
  0x39   :  { %v173_v10 = vld [vmem:[#allocation9] sm:$0xff]  ;;  %v174_v11 = vld [vmem:[#allocation9 + $0x8] sm:$0xff]  ;;  %v176_v13 = vld [vmem:[#allocation9 + $0x18] sm:$0xff]  ;;  %v403_v14 = vpack.c.bf16 %v70_v9, %v69_v8  ;;  %s519_s9 = scalar_lea.vmem %s281_s8, 128  ;;  %p524_p11 = scmp.lt.s32.totalorder %s281_s8, %s281_s8 }
  0x3a   :  { %398 = vmatpush3.bf16.msra.mxu0 %v397_v5  ;;  %v421_v15 = vpack.c.bf16 %v174_v11, %v173_v10  ;;  %v71_v16 = vld [vmem:[#allocation7 + $0x30] sm:$0xff]  ;;  %v72_v17 = vld [vmem:[#allocation7 + $0x38] sm:$0xff]  ;;  %v424_v18 = vpack.c.bf16 %v176_v13, %v175_v12  ;;  %v177_v19 = vld [vmem:[#allocation9 + $0x20] sm:$0xff]  ;;  %p520_p10 = scmp.ne.s32.totalorder %s281_s8, %s519_s9  ;;  %p525_p12 = scmp.lt.s32.totalorder %s519_s9, %s519_s9 }
  0x3b   :  { %399 = vmatprep.subr.bf16.mxu0 %v552_v0  ;;  %v178_v20 = vld [vmem:[#allocation9 + $0x28] sm:$0xff]  ;;  %v406_v21 = vpack.c.bf16 %v72_v17, %v71_v16  ;;  %v73_v22 = vld [vmem:[#allocation7 + $0x40] sm:$0xff]  ;;  %v179_v25 = vld [vmem:[#allocation9 + $0x30] sm:$0xff] }
  0x3c   :  { %422 = vmatpush3.bf16.msra.mxu1 %v421_v15  ;;  %v74_v23 = vld [vmem:[#allocation7 + $0x48] sm:$0xff]  ;;  %v427_v24 = vpack.c.bf16 %v178_v20, %v177_v19  ;;  %v180_v26 = vld [vmem:[#allocation9 + $0x38] sm:$0xff]  ;;  %v75_v28 = vld [vmem:[#allocation7 + $0x50] sm:$0xff]  ;;  %p526_p13 = por %p525_p12, %p524_p11 }
  0x3d   :  { %423 = vmatprep.subr.bf16.mxu1 %v552_v0  ;;  %v409_v27 = vpack.c.bf16 %v74_v23, %v73_v22  ;;  %v76_v29 = vld [vmem:[#allocation7 + $0x58] sm:$0xff]  ;;  %v430_v30 = vpack.c.bf16 %v180_v26, %v179_v25  ;;  %v181_v31 = vld [vmem:[#allocation9 + $0x40] sm:$0xff]  ;;  %v182_v32 = vld [vmem:[#allocation9 + $0x48] sm:$0xff] }
  0x3e   :  { %401 = vmatpush3.bf16.msra.mxu0 %v400_v7  ;;  %v412_v33 = vpack.c.bf16 %v76_v29, %v75_v28  ;;  %v77_v34 = vld [vmem:[#allocation7 + $0x60] sm:$0xff]  ;;  %v78_v35 = vld [vmem:[#allocation7 + $0x68] sm:$0xff]  ;;  %v433_v36 = vpack.c.bf16 %v182_v32, %v181_v31  ;;  %v183_v37 = vld [vmem:[#allocation9 + $0x50] sm:$0xff]  ;;  %p527_p0 = pnand %p526_p13, %p520_p10 }
  0x3f   :  { %402 = vmatprep.subr.bf16.mxu0 %v552_v0  ;;  %v184_v38 = vld [vmem:[#allocation9 + $0x58] sm:$0xff]  ;;  %v415_v39 = vpack.c.bf16 %v78_v35, %v77_v34  ;;  %v79_v40 = vld [vmem:[#allocation7 + $0x70] sm:$0xff]  ;;  %v185_v43 = vld [vmem:[#allocation9 + $0x60] sm:$0xff] }
  0x40   :  { %425 = vmatpush3.bf16.msra.mxu1 %v424_v18  ;;  %v80_v41 = vld [vmem:[#allocation7 + $0x78] sm:$0xff]  ;;  %v436_v42 = vpack.c.bf16 %v184_v38, %v183_v37  ;;  %v186_v44 = vld [vmem:[#allocation9 + $0x68] sm:$0xff]  ;;  %v187_v48 = vld [vmem:[#allocation9 + $0x70] sm:$0xff] }
  0x41   :  { %426 = vmatprep.subr.bf16.mxu1 %v552_v0  ;;  %v418_v45 = vpack.c.bf16 %v80_v41, %v79_v40  ;;  %v439_v46 = vpack.c.bf16 %v186_v44, %v185_v43  ;;  %v64_v47 = vld [vmem:[#allocation4] sm:$0xff] }
  0x42   :  { %404 = vmatpush3.bf16.msra.mxu0 %v403_v14  ;;  %v188_v49 = vld [vmem:[#allocation9 + $0x78] sm:$0xff] }
  0x43   :  { %405 = vmatprep.subr.bf16.mxu0 %v552_v0  ;;  %v442_v50 = vpack.c.bf16 %v188_v49, %v187_v48  ;;  %v290_v51 = vld [vmem:[%s664_s2] ss:$0 sm:$0xff] }
  0x44   :  { %428 = vmatpush3.bf16.msra.mxu1 %v427_v24  ;;  %v291_v57 = vld [vmem:[%s666_s4] ss:$0 sm:$0xff] }
  0x45   :  { %429 = vmatprep.subr.bf16.mxu1 %v552_v0 }
  0x46   :  { %407 = vmatpush3.bf16.msra.mxu0 %v406_v21 }
  0x47   :  { %408 = vmatprep.subr.bf16.mxu0 %v552_v0 }
  0x48   :  { %431 = vmatpush3.bf16.msra.mxu1 %v430_v30 }
  0x49   :  { %432 = vmatprep.subr.bf16.mxu1 %v552_v0 }
  0x4a   :  { %410 = vmatpush3.bf16.msra.mxu0 %v409_v27 }
  0x4b   :  { %411 = vmatprep.subr.bf16.mxu0 %v552_v0 }
  0x4c   :  { %434 = vmatpush3.bf16.msra.mxu1 %v433_v36 }
  0x4d   :  { %435 = vmatprep.subr.bf16.mxu1 %v552_v0 }
  0x4e   :  { %413 = vmatpush3.bf16.msra.mxu0 %v412_v33 }
  0x4f   :  { %414 = vmatprep.subr.bf16.mxu0 %v552_v0 }
  0x50   :  { %437 = vmatpush3.bf16.msra.mxu1 %v436_v42 }
  0x51   :  { %438 = vmatprep.subr.bf16.mxu1 %v552_v0 }
  0x52   :  { %416 = vmatpush3.bf16.msra.mxu0 %v415_v39 }
  0x53   :  { %417 = vmatprep.subr.bf16.mxu0 %v552_v0 }
  0x54   :  { %440 = vmatpush3.bf16.msra.mxu1 %v439_v46 }
  0x55   :  { %441 = vmatprep.subr.bf16.mxu1 %v552_v0 }
  0x56   :  { %419 = vmatpush3.bf16.msra.mxu0 %v418_v45 }
  0x58   :  { %443 = vmatpush3.bf16.msra.mxu1 %v442_v50 }
  0x59   :  { %359 = vmatmul.mubr.f32.vlgmr.msra.gmra.mrb[0].mxu0 %v64_v47 }
 0x12c   :  { %v154_v52 = vpop.f32.mrb[0].mxu0 }
 0x12d   :  { %v155_v53 = vadd.f32 %v290_v51, %v154_v52  ;;  %v360_v54 = vpop.f32.mrb[1].mxu0 }
 0x12f   :  { %v159_v55 = vmul.f32 0.01, %v155_v53  ;;  %vm158_vm1 = vcmp.gt.f32.partialorder %v155_v53, 0.0 }
 0x131   :  { %v160_v56 = vsel %vm158_vm1, %v155_v53, %v159_v55 }
 0x132   :  { %394 = vmatmul.mubr.f32.vlgmr.msra.gmra.mrb[0].mxu1 %v160_v56 }
 0x205   :  { %v255_v58 = vpop.f32.mrb[0].mxu1 }
 0x206   :  { %v272_v59 = vadd.f32 %v291_v57, %v255_v58  ;;  %v395_v60 = vpop.f32.mrb[1].mxu1 }
 0x208   :  { %273 = vst [vmem:[#allocation10] sm:$0xff] %v272_v59 }
 0x209   :  { %530 = shalt.err (!%p527_p0)
}
 0x20a   :  { %s531_s11 = scalar_lea.hbm %s667_s5, 128 }
 0x20b   :  { %p532_p1 = scmp.ne.s32.totalorder %s667_s5, %s531_s11  ;;  %p535_p2 = scmp.lt.u32.totalorder %s531_s11, %s667_s5 }
 0x20d   :  { %p537_p3 = pnand %p535_p2, %p532_p1 }
 0x20f   :  { %540 = shalt.err (!%p537_p3)
}
 0x210   :  { %283 = dma.vmem_to_hbm [thread:$0]  %s281_s8, 128, %s667_s5, [#allocation6]  }
 0x211   :  { %545 = dma.done.wait [#allocation6], 128  }
 0x212   :  { %546 = vsyncadd [#allocation6], 4294967168 }
 0x213   :  { %287 = vsyncpa [#allocation5], 1 }
 0x214   :  { %288 = vsyncpa [#allocation8], 1 }
 0x215   :  { %289 = vsyncpa [#allocation6], 1 }

</bundles_post_ra>
